<compile_context>
chip_gen: v7x
topology: tpu7x:2x2x1
jax: 0.10.0
libtpu: 0.0.40
codegen_flags: <defaults>
</compile_context>

<pallas_src>
import functools

import jax
import jax.numpy as jnp
from jax.experimental import pallas as pl
from jax.experimental.pallas import tpu as pltpu


def _iou_sums_kernel(x_ref, t_ref, out_ref, acc_pr, acc_gt, acc_in, *, hw, thw):
    """Per-batch, per-class reduction over pixel tiles.

    x_ref   : (1, C, THW) logits tile   (classes on sublanes, pixels on lanes)
    t_ref   : (1, C, THW) target tile
    out_ref : (1, C, 3)   per-batch output -> [:, :, 0]=sum_pr, 1=sum_gt, 2=sum_inter
    acc_*   : (C, THW)    lane-dense f32 VMEM accumulators (resident per batch)
    """
    i = pl.program_id(1)
    n_tiles = pl.num_programs(1)

    @pl.when(i == 0)
    def _init():
        acc_pr[...] = jnp.zeros_like(acc_pr)
        acc_gt[...] = jnp.zeros_like(acc_gt)
        acc_in[...] = jnp.zeros_like(acc_in)

    x = x_ref[0].astype(jnp.float32)   # (C, THW)
    t = t_ref[0].astype(jnp.float32)   # (C, THW)

    rem = hw % thw                     # static python int
    if rem:
        # Only the last pixel tile is ragged; zero out the out-of-bounds lanes
        # (garbage data) before/after the softmax so they contribute nothing.
        valid = jnp.where(i == n_tiles - 1, rem, thw)
        lane = jax.lax.broadcasted_iota(jnp.int32, x.shape, 1)
        mask = lane < valid
        x = jnp.where(mask, x, 0.0)
        t = jnp.where(mask, t, 0.0)

    # numerically-stable softmax along the class (sublane) axis
    x_max = jnp.max(x, axis=0, keepdims=True)              # (1, THW)
    e = jnp.exp(x - x_max)                                  # EUP
    denom = jnp.sum(e, axis=0, keepdims=True)               # (1, THW)
    pr = e * pl.reciprocal(denom, approx=True)              # EUP reciprocal

    if rem:
        pr = jnp.where(mask, pr, 0.0)

    # element-wise accumulation (pure VPU adds, no per-tile cross-lane reduce)
    acc_pr[...] += pr
    acc_gt[...] += t
    acc_in[...] += pr * t

    @pl.when(i == n_tiles - 1)
    def _finalize():
        out_ref[0] = jnp.concatenate(
            [
                jnp.sum(acc_pr[...], axis=-1, keepdims=True),
                jnp.sum(acc_gt[...], axis=-1, keepdims=True),
                jnp.sum(acc_in[...], axis=-1, keepdims=True),
            ],
            axis=-1,
        )  # (C, 3)


@functools.partial(jax.jit, static_argnames=("tile_pixels",))
def iou_metric(logits_nchw, target_nchw, eps=1e-07, tile_pixels=16384):
    """Equivalent of IoU(class_weights=1.0, threshold=None).forward(input, target)."""
    n, c, h, w = logits_nchw.shape
    hw = h * w

    # Contiguous (free) reshape -- no transpose, no extra HBM pass.
    x = logits_nchw.reshape(n, c, hw)
    t = target_nchw.reshape(n, c, hw)

    # Pixel-tile size: full HW if small, otherwise a 128-multiple chunk
    # (0.5 MiB of real input data per grid step at the default).
    if hw <= tile_pixels:
        thw = hw
    else:
        thw = tile_pixels  # multiple of 128
    num_tiles = pl.cdiv(hw, thw)

    sums = pl.pallas_call(
        functools.partial(_iou_sums_kernel, hw=hw, thw=thw),
        out_shape=jax.ShapeDtypeStruct((n, c, 3), jnp.float32),
        grid_spec=pltpu.PrefetchScalarGridSpec(
            num_scalar_prefetch=0,
            grid=(n, num_tiles),
            in_specs=[
                pl.BlockSpec((1, c, thw), lambda b, i: (b, 0, i)),
                pl.BlockSpec((1, c, thw), lambda b, i: (b, 0, i)),
            ],
            out_specs=pl.BlockSpec((1, c, 3), lambda b, i: (b, 0, 0)),
            scratch_shapes=[
                pltpu.VMEM((c, thw), jnp.float32),
                pltpu.VMEM((c, thw), jnp.float32),
                pltpu.VMEM((c, thw), jnp.float32),
            ],
        ),
        compiler_params=pltpu.CompilerParams(
            # batch axis: distinct output block per batch -> safe megacore
            # sharding on v7x; pixel-tile axis: sequential reduction.
            dimension_semantics=("parallel", "arbitrary"),
        ),
    )(x, t)

    totals = jnp.sum(sums, axis=0)      # (C, 3): reduce per-batch partials
    sum_pr = totals[:, 0]
    sum_gt = totals[:, 1]
    sum_in = totals[:, 2]

    # per-class IoU for classes 1..C-1 (module skips background class 0), then mean
    inter = sum_in[1:]
    union = sum_gt[1:] + sum_pr[1:] - inter + eps
    scores = (inter + eps) / union
    # TODO(synk): threshold binarization path (module default threshold=None).
    return jnp.mean(scores)


if __name__ == "__main__":
    key = jax.random.PRNGKey(0)
    k1, k2 = jax.random.split(key)

    N, C, H, W = 2, 4, 16, 16
    logits = jax.random.normal(k1, (N, C, H, W), dtype=jnp.float32)
    # one-hot target: random class labels -> one-hot along channel dim (NCHW)
    labels = jax.random.randint(k2, (N, H, W), 0, C)
    target = jax.nn.one_hot(labels, C, dtype=jnp.float32)          # (N,H,W,C)
    target = jnp.transpose(target, (0, 3, 1, 2))                   # NCHW

    out = iou_metric(logits, target)
    out = jax.block_until_ready(out)

    # pure-JAX reference check
    pr = jax.nn.softmax(logits, axis=1)
    scores_ref = []
    for i in range(1, C):
        ypr = pr[:, i]
        ygt = target[:, i]
        inter = jnp.sum(ygt * ypr)
        union = jnp.sum(ygt) + jnp.sum(ypr) - inter + 1e-07
        scores_ref.append((inter + 1e-07) / union)
    ref = sum(scores_ref) / len(scores_ref)
    # slightly loose tolerance: softmax uses the EUP approx reciprocal
    assert jnp.allclose(out, ref, rtol=2e-3, atol=1e-5), (out, ref)

    print("KERNEL_OK")
</pallas_src>

<mosaic_0001>
module attributes {stable_mosaic.version = 11 : i64} {
  func.func @_iou_sums_kernel(%arg0: i32, %arg1: i32, %arg2: memref<1x4x256xf32, #tpu.memory_space<vmem>>, %arg3: memref<1x4x256xf32, #tpu.memory_space<vmem>>, %arg4: memref<1x4x3xf32, #tpu.memory_space<vmem>>, %arg5: memref<4x256xf32, #tpu.memory_space<vmem>>, %arg6: memref<4x256xf32, #tpu.memory_space<vmem>>, %arg7: memref<4x256xf32, #tpu.memory_space<vmem>>) attributes {dimension_semantics = [#tpu.dimension_semantics<parallel>, #tpu.dimension_semantics<arbitrary>], iteration_bounds = array<i64: 2, 1>, scalar_prefetch = 0 : i64, scratch_operands = 3 : i64, tpu.core_type = #tpu.core_type<tc>, window_params = [{transform_indices = @transform_0, window_bounds = array<i64: 1, 4, 256>}, {transform_indices = @transform_1, window_bounds = array<i64: 1, 4, 256>}, {transform_indices = @transform_2, window_bounds = array<i64: 1, 4, 3>}]} {
    %c0_i32 = arith.constant 0 : i32
    %0 = arith.cmpi eq, %arg1, %c0_i32 : i32
    %1 = arith.extui %0 : i1 to i32
    %c0_i32_0 = arith.constant 0 : i32
    %2 = arith.cmpi ne, %1, %c0_i32_0 : i32
    scf.if %2 {
      %cst_21 = arith.constant 0.000000e+00 : f32
      %30 = vector.broadcast %cst_21 : f32 to vector<4x256xf32>
      %c0_22 = arith.constant 0 : index
      %c0_23 = arith.constant 0 : index
      %31 = vector.load %arg5[%c0_22, %c0_23] : memref<4x256xf32, #tpu.memory_space<vmem>>, vector<4x256xf32>
      tpu.vector_store %arg5[%c0_22, %c0_23], %30 {strides = array<i32>} : memref<4x256xf32, #tpu.memory_space<vmem>>, vector<4x256xf32>,
      %cst_24 = arith.constant 0.000000e+00 : f32
      %32 = vector.broadcast %cst_24 : f32 to vector<4x256xf32>
      %c0_25 = arith.constant 0 : index
      %c0_26 = arith.constant 0 : index
      %33 = vector.load %arg6[%c0_25, %c0_26] : memref<4x256xf32, #tpu.memory_space<vmem>>, vector<4x256xf32>
      tpu.vector_store %arg6[%c0_25, %c0_26], %32 {strides = array<i32>} : memref<4x256xf32, #tpu.memory_space<vmem>>, vector<4x256xf32>,
      %cst_27 = arith.constant 0.000000e+00 : f32
      %34 = vector.broadcast %cst_27 : f32 to vector<4x256xf32>
      %c0_28 = arith.constant 0 : index
      %c0_29 = arith.constant 0 : index
      %35 = vector.load %arg7[%c0_28, %c0_29] : memref<4x256xf32, #tpu.memory_space<vmem>>, vector<4x256xf32>
      tpu.vector_store %arg7[%c0_28, %c0_29], %34 {strides = array<i32>} : memref<4x256xf32, #tpu.memory_space<vmem>>, vector<4x256xf32>,
    } else {
    }
    %c0 = arith.constant 0 : index
    %c0_1 = arith.constant 0 : index
    %c0_2 = arith.constant 0 : index
    %3 = vector.load %arg2[%c0, %c0_1, %c0_2] : memref<1x4x256xf32, #tpu.memory_space<vmem>>, vector<1x4x256xf32>
    %4 = vector.shape_cast %3 : vector<1x4x256xf32> to vector<4x256xf32>
    %c0_3 = arith.constant 0 : index
    %c0_4 = arith.constant 0 : index
    %c0_5 = arith.constant 0 : index
    %5 = vector.load %arg3[%c0_3, %c0_4, %c0_5] : memref<1x4x256xf32, #tpu.memory_space<vmem>>, vector<1x4x256xf32>
    %6 = vector.shape_cast %5 : vector<1x4x256xf32> to vector<4x256xf32>
    %cst = arith.constant dense<0xFF800000> : vector<256xf32>
    %7 = vector.multi_reduction <maximumf>, %4, %cst [0] : vector<4x256xf32> to vector<256xf32>
    %8 = vector.shape_cast %7 : vector<256xf32> to vector<1x256xf32>
    %9 = vector.broadcast %8 : vector<1x256xf32> to vector<4x256xf32>
    %10 = arith.subf %4, %9 : vector<4x256xf32>
    %11 = math.exp %10 : vector<4x256xf32>
    %cst_6 = arith.constant dense<0.000000e+00> : vector<256xf32>
    %12 = vector.multi_reduction <add>, %11, %cst_6 [0] : vector<4x256xf32> to vector<256xf32>
    %13 = vector.shape_cast %12 : vector<256xf32> to vector<1x256xf32>
    %14 = tpu.reciprocal %13 {approx = true} : vector<1x256xf32> -> vector<1x256xf32>
    %15 = vector.broadcast %14 : vector<1x256xf32> to vector<4x256xf32>
    %16 = arith.mulf %11, %15 : vector<4x256xf32>
    %c0_7 = arith.constant 0 : index
    %c0_8 = arith.constant 0 : index
    %17 = vector.load %arg5[%c0_7, %c0_8] : memref<4x256xf32, #tpu.memory_space<vmem>>, vector<4x256xf32>
    %18 = arith.addf %17, %16 : vector<4x256xf32>
    %c0_9 = arith.constant 0 : index
    %c0_10 = arith.constant 0 : index
    %19 = vector.load %arg5[%c0_9, %c0_10] : memref<4x256xf32, #tpu.memory_space<vmem>>, vector<4x256xf32>
    tpu.vector_store %arg5[%c0_9, %c0_10], %18 {strides = array<i32>} : memref<4x256xf32, #tpu.memory_space<vmem>>, vector<4x256xf32>,
    %c0_11 = arith.constant 0 : index
    %c0_12 = arith.constant 0 : index
    %20 = vector.load %arg6[%c0_11, %c0_12] : memref<4x256xf32, #tpu.memory_space<vmem>>, vector<4x256xf32>
    %21 = arith.addf %20, %6 : vector<4x256xf32>
    %c0_13 = arith.constant 0 : index
    %c0_14 = arith.constant 0 : index
    %22 = vector.load %arg6[%c0_13, %c0_14] : memref<4x256xf32, #tpu.memory_space<vmem>>, vector<4x256xf32>
    tpu.vector_store %arg6[%c0_13, %c0_14], %21 {strides = array<i32>} : memref<4x256xf32, #tpu.memory_space<vmem>>, vector<4x256xf32>,
    %c0_15 = arith.constant 0 : index
    %c0_16 = arith.constant 0 : index
    %23 = vector.load %arg7[%c0_15, %c0_16] : memref<4x256xf32, #tpu.memory_space<vmem>>, vector<4x256xf32>
    %24 = arith.mulf %16, %6 : vector<4x256xf32>
    %25 = arith.addf %23, %24 : vector<4x256xf32>
    %c0_17 = arith.constant 0 : index
    %c0_18 = arith.constant 0 : index
    %26 = vector.load %arg7[%c0_17, %c0_18] : memref<4x256xf32, #tpu.memory_space<vmem>>, vector<4x256xf32>
    tpu.vector_store %arg7[%c0_17, %c0_18], %25 {strides = array<i32>} : memref<4x256xf32, #tpu.memory_space<vmem>>, vector<4x256xf32>,
    %c0_i32_19 = arith.constant 0 : i32
    %27 = arith.cmpi eq, %arg1, %c0_i32_19 : i32
    %28 = arith.extui %27 : i1 to i32
    %c0_i32_20 = arith.constant 0 : i32
    %29 = arith.cmpi ne, %28, %c0_i32_20 : i32
    scf.if %29 {
      %c0_21 = arith.constant 0 : index
      %c0_22 = arith.constant 0 : index
      %30 = vector.load %arg5[%c0_21, %c0_22] : memref<4x256xf32, #tpu.memory_space<vmem>>, vector<4x256xf32>
      %cst_23 = arith.constant dense<0.000000e+00> : vector<4xf32>
      %31 = vector.multi_reduction <add>, %30, %cst_23 [1] : vector<4x256xf32> to vector<4xf32>
      %32 = vector.shape_cast %31 : vector<4xf32> to vector<4x1xf32>
      %c0_24 = arith.constant 0 : index
      %c0_25 = arith.constant 0 : index
      %33 = vector.load %arg6[%c0_24, %c0_25] : memref<4x256xf32, #tpu.memory_space<vmem>>, vector<4x256xf32>
      %cst_26 = arith.constant dense<0.000000e+00> : vector<4xf32>
      %34 = vector.multi_reduction <add>, %33, %cst_26 [1] : vector<4x256xf32> to vector<4xf32>
      %35 = vector.shape_cast %34 : vector<4xf32> to vector<4x1xf32>
      %c0_27 = arith.constant 0 : index
      %c0_28 = arith.constant 0 : index
      %36 = vector.load %arg7[%c0_27, %c0_28] : memref<4x256xf32, #tpu.memory_space<vmem>>, vector<4x256xf32>
      %cst_29 = arith.constant dense<0.000000e+00> : vector<4xf32>
      %37 = vector.multi_reduction <add>, %36, %cst_29 [1] : vector<4x256xf32> to vector<4xf32>
      %38 = vector.shape_cast %37 : vector<4xf32> to vector<4x1xf32>
      %39 = tpu.concatenate %32, %35, %38 in 1 : vector<4x1xf32>, vector<4x1xf32>, vector<4x1xf32> -> vector<4x3xf32>
      %c0_30 = arith.constant 0 : index
      %c0_31 = arith.constant 0 : index
      %c0_32 = arith.constant 0 : index
      %40 = vector.load %arg4[%c0_30, %c0_31, %c0_32] : memref<1x4x3xf32, #tpu.memory_space<vmem>>, vector<1x4x3xf32>
      %41 = vector.shape_cast %40 : vector<1x4x3xf32> to vector<4x3xf32>
      %42 = vector.shape_cast %39 : vector<4x3xf32> to vector<1x4x3xf32>
      tpu.vector_store %arg4[%c0_30, %c0_31, %c0_32], %42 {strides = array<i32>} : memref<1x4x3xf32, #tpu.memory_space<vmem>>, vector<1x4x3xf32>,
    } else {
    }
    return
  }
  func.func @transform_0(%arg0: i32, %arg1: i32) -> (i32, i32, i32) {
    %c0_i32 = arith.constant 0 : i32
    %c0_i32_0 = arith.constant 0 : i32
    return %arg0, %c0_i32, %arg1 : i32, i32, i32
  }
  func.func @transform_1(%arg0: i32, %arg1: i32) -> (i32, i32, i32) {
    %c0_i32 = arith.constant 0 : i32
    %c0_i32_0 = arith.constant 0 : i32
    return %arg0, %c0_i32, %arg1 : i32, i32, i32
  }
  func.func @transform_2(%arg0: i32, %arg1: i32) -> (i32, i32, i32) {
    %c0_i32 = arith.constant 0 : i32
    %c0_i32_0 = arith.constant 0 : i32
    %c0_i32_1 = arith.constant 0 : i32
    return %arg0, %c0_i32, %c0_i32_0 : i32, i32, i32
  }
}

</mosaic_0001>

<bundles_post_ra>
// kernel: iou_metric.1
= control target key start
LH: loop header
LB: loop body
LE: loop exit
PB: predicated region body
PF: predicated region fallthrough
CT: control target
= control target key end

     0   :  { %s480_s9 = smov 0   ;;  %s482_s10 = smov 0   ;;  %s534_s0 = inlined_call_operand.vmem [shape: f32[2,4,256], index: 0, kind: input, shape index: {}]   ;;  %s535_s1 = inlined_call_operand.vmem [shape: f32[2,4,256], index: 1, kind: input, shape index: {}]   ;;  %s536_s2 = inlined_call_operand.vmem [shape: f32[2,4,3], index: 2, kind: output, shape index: {}]  }
   0x1   :  { %s484_s11 = smov 0  }
   0x2 LB: > { %s24_s12 = sadd.s32 1, %s459_s10  ;;  %p399_p0 = scmp.ge.s32.totalorder %s463_s11, 1  ;;  %s463_s11 = sphi %s484_s11, %s12_s11   ;;  %s459_s10 = sphi %s482_s10, %s538_s10   ;;  %s455_s9 = sphi %s480_s9, %s537_s9  }
   0x3   : > { %p26_p1 = scmp.ge.s32.totalorder %s24_s12, 2  ;;  %p148_p2 = scmp.lt.s32.totalorder %s463_s11, 3 }
   0x5   : > { %s540_s12 = smov (%p26_p1, %s24_s12), 0  ;;  %p149_p3 = pnand %p399_p0, %p148_p2 }
   0x6   : > { %p183_p4 = scmp.lt.s32.totalorder (!%p149_p3), %s455_s9, 1  ;;  %vm218_vm0 = vcmask (!%p149_p3), 1043456   ;;  %vm304_vm1 = vcmask (!%p149_p3), 7168   ;;  %vm306_vm2 = vcmask (!%p149_p3), 15360   ;;  %vm308_vm3 = vcmask (!%p149_p3), 19456  }
   0x7   : > { %152 = sbr.rel (%p149_p3) target bundleno = 234 (0xea), region = 28 }
   0xe   : > { %s542_s9 = smov (!%p183_p4, %s455_s9), 1 }
   0xf   : > { %s407_s13 = sshll.u32 %s542_s9, 3  ;;  %s404_s20 = sshll.u32 %s542_s9, 2 }
  0x10   : > { %s190_s16 = scalar_lea.vmem %s534_s0, %s407_s13  ;;  %s200_s19 = scalar_lea.vmem %s535_s1, %s407_s13 }
  0x11   : > { %v213_v0 = vld [vmem:[%s190_s16] sm:$0xff]  ;;  %s205_s23 = scalar_lea.vmem %s536_s2, %s404_s20 }
  0x12   : > { %v216_v1 = vcombine.high %v213_v0, %v213_v0  ;;  %v219_v2 = vsel %vm218_vm0, %v213_v0, -inf  ;;  %v214_v37 = vld [vmem:[%s200_s19] sm:$0xff] }
  0x13   : > { %v220_v3 = vrot.slane %v219_v2, 4  ;;  %v288_v40 = vcombine.high %v214_v37, %v214_v37  ;;  %v290_v44 = vsel %vm218_vm0, %v214_v37, 0.0 }
  0x14   : > { %v226_v4 = vsel %vm218_vm0, %v216_v1, -inf }
  0x15   : > { %v221_v5 = vmax.f32 %v219_v2, %v220_v3  ;;  %v227_v6 = vrot.slane %v226_v4, 4  ;;  %v291_v46 = vsel %vm218_vm0, %v288_v40, 0.0 }
  0x16   : > { %v292_v51 = vadd.f32 %v291_v46, %v290_v44 }
  0x17   : > { %v222_v7 = vrot.slane %v221_v5, 2  ;;  %v228_v8 = vmax.f32 %v226_v4, %v227_v6 }
  0x19   : > { %v223_v9 = vmax.f32 %v221_v5, %v222_v7  ;;  %v229_v10 = vrot.slane %v228_v8, 2 }
  0x1b   : > { %v224_v11 = vrot.slane %v223_v9, 1  ;;  %v230_v12 = vmax.f32 %v228_v8, %v229_v10 }
  0x1d   : > { %v225_v13 = vmax.f32 %v223_v9, %v224_v11  ;;  %v231_v14 = vrot.slane %v230_v12, 1 }
  0x1f   : > { %v232_v15 = vmax.f32 %v230_v12, %v231_v14 }
  0x21   : > { %v235_v16 = vcombine.low %v225_v13, %v232_v15 }
  0x23   : > { %v237_v17 = vsub.f32 %v213_v0, %v235_v16 }
  0x25   : > { %v238_v18 = vmul.f32 1.442695, %v237_v17 }
  0x27   : > { %435 = vpow2.f32 %v238_v18 }
  0x31   : > { %v436_v19 = vpop.eup %435 }
  0x32   : > { %v241_v20 = vcombine.high %v436_v19, %v436_v19  ;;  %v243_v21 = vsel %vm218_vm0, %v436_v19, 0.0 }
  0x33   : > { %v244_v22 = vrot.slane %v243_v21, 4 }
  0x34   : > { %v250_v23 = vsel %vm218_vm0, %v241_v20, 0.0 }
  0x35   : > { %v245_v24 = vadd.f32 %v244_v22, %v243_v21  ;;  %v251_v25 = vrot.slane %v250_v23, 4 }
  0x37   : > { %v246_v26 = vrot.slane %v245_v24, 2  ;;  %v252_v27 = vadd.f32 %v251_v25, %v250_v23 }
  0x39   : > { %v247_v28 = vadd.f32 %v246_v26, %v245_v24  ;;  %v253_v29 = vrot.slane %v252_v27, 2 }
  0x3b   : > { %v248_v30 = vrot.slane %v247_v28, 1  ;;  %v254_v31 = vadd.f32 %v253_v29, %v252_v27 }
  0x3d   : > { %v249_v32 = vadd.f32 %v248_v30, %v247_v28  ;;  %v255_v33 = vrot.slane %v254_v31, 1 }
  0x3f   : > { %v256_v34 = vadd.f32 %v255_v33, %v254_v31  ;;  %437 = vrcp.f32 %v249_v32 }
  0x41   : > { %439 = vrcp.f32 %v256_v34 }
  0x49   : > { %v438_v35 = vpop.eup %437 }
  0x4b   : > { %v440_v36 = vpop.eup %439 }
  0x4c   : > { %v261_v38 = vcombine.low %v438_v35, %v440_v36 }
  0x4e   : > { %v263_v39 = vmul.f32 %v436_v19, %v261_v38 }
  0x50   : > { %v279_v41 = vcombine.high %v263_v39, %v263_v39  ;;  %v281_v42 = vsel %vm218_vm0, %v263_v39, 0.0  ;;  %v271_v43 = vmul.f32 %v263_v39, %v214_v37 }
  0x52   : > { %v282_v45 = vsel %vm218_vm0, %v279_v41, 0.0  ;;  %v297_v47 = vcombine.high %v271_v43, %v271_v43  ;;  %v299_v48 = vsel %vm218_vm0, %v271_v43, 0.0 }
  0x53   : > { %v283_v49 = vadd.f32 %v282_v45, %v281_v42 }
  0x54   : > { %v300_v50 = vsel %vm218_vm0, %v297_v47, 0.0 }
  0x55   : > { %284 = vadd.xlane.f32.xlu0 %v283_v49  ;;  %v301_v52 = vadd.f32 %v300_v50, %v299_v48 }
  0x57   : > { %302 = vadd.xlane.f32.xlu1 %v301_v52 }
  0x59   : > { %293 = vadd.xlane.f32.xlu0 %v292_v51 }
  0xe2   : > { %v285_v53 = vpop.xlane.xlu0 %284 }
  0xe4   : > { %v303_v54 = vpop.xlane.xlu1 %302 }
  0xe6   : > { %v294_v55 = vpop.xlane.xlu0 %293 }
  0xe7   : > { %v305_v56 = vsel %vm304_vm1, %v285_v53, %v294_v55 }
  0xe8   : > { %v307_v57 = vsel %vm306_vm2, %v305_v56, %v303_v54 }
  0xe9   : > { %309 = vst.msk [vmem:[%s205_s23] sm:$0xf] %vm308_vm3, %v307_v57 }
  0xea PF: > { %s12_s11 = sadd.s32 1, %s463_s11   ;;  %s537_s9 = smov %s459_s10 }
  0xeb   : > { %p9_p5 = scmp.ge.s32.totalorder %s12_s11, 4   ;;  %s538_s10 = smov %s540_s12 }
  0xed   :  { %11 = sbr.rel (!%p9_p5) target bundleno = 2 (0x2), region = 69 }

</bundles_post_ra>
